<compile_context>
chip_gen: v7x
topology: tpu7x:2x2x1
jax: 0.10.0
libtpu: 0.0.40
codegen_flags: <defaults>
</compile_context>

<pallas_src>
import math

import jax
import jax.numpy as jnp
from jax import lax
from jax.experimental import pallas as pl
from jax.experimental.pallas import tpu as pltpu

HIGHEST = lax.Precision.HIGHEST

_VMEM = pl.BlockSpec(memory_space=pltpu.MemorySpace.VMEM)


# ---------------------------------------------------------------------------
# Pallas kernels
# ---------------------------------------------------------------------------
def _make_bilstm_kernel(T, B, H, in_widths, emit_seq):
    """Build a bidirectional LSTM layer kernel.

    Inputs (refs, in order):
      x streams:   len(in_widths) arrays of shape (T*B, w_s)  (time-major, flat)
      wih_f (sum(w_s), 4H) bf16, whh_f (H, 4H) bf16, b_f (1, 4H) f32
      wih_b (sum(w_s), 4H) bf16, whh_b (H, 4H) bf16, b_b (1, 4H) f32
    Outputs:
      if emit_seq: seq_f (T, B, H) bf16, seq_b (T, B, H) bf16, hN (B, 2H) f32
      else:        hN (B, 2H) f32
    Scratch:
      preg_f, preg_b : (T*B, 4H) f32   (hoisted input projections)

    Gate column order is [i | f | o | g].
    """
    n_in = len(in_widths)
    offs = [0]
    for w in in_widths:
        offs.append(offs[-1] + w)
    G = 4 * H

    def kernel(*refs):
        x_refs = refs[:n_in]
        wih_f_ref, whh_f_ref, b_f_ref, wih_b_ref, whh_b_ref, b_b_ref = \
            refs[n_in:n_in + 6]
        if emit_seq:
            seq_f_ref, seq_b_ref, hn_ref = refs[n_in + 6:n_in + 9]
            preg_f_ref, preg_b_ref = refs[n_in + 9:n_in + 11]
        else:
            hn_ref = refs[n_in + 6]
            preg_f_ref, preg_b_ref = refs[n_in + 7:n_in + 9]

        # ---- hoisted input projection: one MXU matmul per direction --------
        def project(wih_ref, bias_ref, out_ref):
            acc = None
            for s in range(n_in):
                xs = x_refs[s][...].astype(jnp.bfloat16)          # (T*B, w_s)
                w = wih_ref[offs[s]:offs[s + 1], :]               # (w_s, 4H) bf16
                d = jnp.dot(xs, w, preferred_element_type=jnp.float32)
                acc = d if acc is None else acc + d
            out_ref[...] = acc + bias_ref[...]                    # (T*B, 4H) f32

        project(wih_f_ref, b_f_ref, preg_f_ref)
        project(wih_b_ref, b_b_ref, preg_b_ref)

        whh_f = whh_f_ref[...]   # (H, 4H) bf16, loop-invariant
        whh_b = whh_b_ref[...]

        def cell(z, c):
            # z: (B, 4H) f32 pre-activations, gate order [i | f | o | g]
            s = jax.nn.sigmoid(z[:, :3 * H])
            i = s[:, :H]
            f = s[:, H:2 * H]
            o = s[:, 2 * H:3 * H]
            g = jnp.tanh(z[:, 3 * H:])
            c_new = f * c + i * g
            h_new = o * jnp.tanh(c_new)
            return h_new, c_new

        def step(t, carry):
            hf, cf, hb, cb = carry
            tb = T - 1 - t
            # forward direction (consumes time t)
            zf = preg_f_ref[pl.ds(t * B, B), :] + jnp.dot(
                hf.astype(jnp.bfloat16), whh_f,
                preferred_element_type=jnp.float32)
            hf, cf = cell(zf, cf)
            # backward direction (consumes time T-1-t)
            zb = preg_b_ref[pl.ds(tb * B, B), :] + jnp.dot(
                hb.astype(jnp.bfloat16), whh_b,
                preferred_element_type=jnp.float32)
            hb, cb = cell(zb, cb)
            if emit_seq:
                seq_f_ref[t] = hf.astype(seq_f_ref.dtype)
                seq_b_ref[tb] = hb.astype(seq_b_ref.dtype)
            return hf, cf, hb, cb

        z0 = jnp.zeros((B, H), jnp.float32)
        hf, cf, hb, cb = lax.fori_loop(0, T, step, (z0, z0, z0, z0))
        hn_ref[:, :H] = hf
        hn_ref[:, H:] = hb

    return kernel


def _make_mlp_kernel(num_chunks, chunk_dim):
    """Linear(num_chunks*chunk_dim -> 256) -> ReLU -> Linear(256 -> C).

    The feature vector is supplied as `num_chunks` separate (B, chunk_dim)
    chunks; feat @ W1 is computed as a sum of per-chunk matmuls (no concat).
    """
    def kernel(*refs):
        hs = refs[:num_chunks]
        w1_ref, b1_ref, w2_ref, b2_ref, out_ref = refs[num_chunks:]
        acc = None
        for s in range(num_chunks):
            xs = hs[s][...].astype(jnp.bfloat16)                   # (B, chunk)
            w = w1_ref[s * chunk_dim:(s + 1) * chunk_dim, :]       # (chunk, 256)
            d = jnp.dot(xs, w, preferred_element_type=jnp.float32)
            acc = d if acc is None else acc + d
        h = jnp.maximum(acc + b1_ref[...], 0.0)
        out_ref[...] = jnp.dot(h.astype(jnp.bfloat16), w2_ref[...],
                               preferred_element_type=jnp.float32) + b2_ref[...]

    return kernel


# ---------------------------------------------------------------------------
# Wrappers
# ---------------------------------------------------------------------------
def _bilstm_layer(streams, p_fwd, p_bwd, *, T, B, H, emit_seq):
    wih_f, whh_f, b_f = p_fwd
    wih_b, whh_b, b_b = p_bwd
    in_widths = tuple(int(s.shape[-1]) for s in streams)
    G = 4 * H
    kernel = _make_bilstm_kernel(T, B, H, in_widths, emit_seq)

    sds_hn = jax.ShapeDtypeStruct((B, 2 * H), jnp.float32)
    if emit_seq:
        sds_seq = jax.ShapeDtypeStruct((T, B, H), jnp.bfloat16)
        out_shape = (sds_seq, sds_seq, sds_hn)
        out_specs = (_VMEM, _VMEM, _VMEM)
    else:
        out_shape = sds_hn
        out_specs = _VMEM

    return pl.pallas_call(
        kernel,
        out_shape=out_shape,
        in_specs=[_VMEM] * (len(streams) + 6),
        out_specs=out_specs,
        scratch_shapes=[pltpu.VMEM((T * B, G), jnp.float32),
                        pltpu.VMEM((T * B, G), jnp.float32)],
    )(*streams,
      wih_f.astype(jnp.bfloat16), whh_f.astype(jnp.bfloat16), b_f,
      wih_b.astype(jnp.bfloat16), whh_b.astype(jnp.bfloat16), b_b)


def _mlp_head(h_chunks, w1, b1, w2, b2):
    B = h_chunks[0].shape[0]
    chunk_dim = int(h_chunks[0].shape[1])
    num_classes = w2.shape[-1]
    kernel = _make_mlp_kernel(len(h_chunks), chunk_dim)
    # Note: the (B, num_classes) store is lane-masked (10 < 128); negligible at
    # this size.  For larger heads, pad W2/b2 to a 128-multiple and slice.
    return pl.pallas_call(
        kernel,
        out_shape=jax.ShapeDtypeStruct((B, num_classes), jnp.float32),
        in_specs=[_VMEM] * (len(h_chunks) + 4),
        out_specs=_VMEM,
    )(*h_chunks, w1.astype(jnp.bfloat16), b1, w2.astype(jnp.bfloat16), b2)


def recurrent_melspect_classifier(params, x, lens, *, hidden, num_layers):
    """Forward pass matching the PyTorch module.

    x:    (B, 64, T) float32 mel-spectrogram
    lens: (B,) int32   (unused -- the PyTorch forward never consumes it)
    """
    del lens  # unused, exactly like the reference forward
    B, F, T = x.shape
    H = hidden

    # Single fused transpose to time-major (T, B, F); the reshape to (T*B, F)
    # is a free, contiguous metadata-only change.
    x_tbf = jnp.transpose(x, (2, 0, 1))
    streams = [x_tbf.reshape(T * B, F)]

    finals = []
    for layer in range(num_layers):
        p_f = params["lstm"][2 * layer + 0]
        p_b = params["lstm"][2 * layer + 1]
        emit_seq = layer + 1 < num_layers
        if emit_seq:
            seq_f, seq_b, h_n = _bilstm_layer(streams, p_f, p_b,
                                              T=T, B=B, H=H, emit_seq=True)
            streams = [seq_f.reshape(T * B, H), seq_b.reshape(T * B, H)]
        else:
            h_n = _bilstm_layer(streams, p_f, p_b,
                                T=T, B=B, H=H, emit_seq=False)
        finals.append(h_n)   # (B, 2H) ordered [fwd | bwd] per layer

    # Final features per batch: [l0_fwd, l0_bwd, l1_fwd, l1_bwd, ...]
    # == hidden_states.view(L,2,B,H).permute(2,0,1,3).reshape(B,-1)
    w1, b1, w2, b2 = params["mlp"]
    return _mlp_head(finals, w1, b1, w2, b2)


# TODO(synk): for large T*B, restructure the layer kernel to grid=(T,) with
# h/c carried in VMEM scratch (pipelined pregate/seq DMA) so it fits v7x VMEM.


# ---------------------------------------------------------------------------
# Pure-JAX f32 reference (same param layout: gate columns [i | f | o | g])
# ---------------------------------------------------------------------------
def _lstm_dir_ref(x_tbf, wih, whh, b, reverse):
    T, B, _ = x_tbf.shape
    H = whh.shape[0]
    xs = x_tbf[::-1] if reverse else x_tbf

    def step(carry, x_t):
        h, c = carry
        z = (jnp.dot(x_t, wih, precision=HIGHEST)
             + jnp.dot(h, whh, precision=HIGHEST) + b)
        s = jax.nn.sigmoid(z[:, :3 * H])
        i, f, o = s[:, :H], s[:, H:2 * H], s[:, 2 * H:3 * H]
        g = jnp.tanh(z[:, 3 * H:])
        c = f * c + i * g
        h = o * jnp.tanh(c)
        return (h, c), h

    init = (jnp.zeros((B, H), jnp.float32), jnp.zeros((B, H), jnp.float32))
    (h_last, _), seq = lax.scan(step, init, xs)
    if reverse:
        seq = seq[::-1]
    return seq, h_last


def _forward_ref(params, x, *, num_layers):
    layer_in = jnp.transpose(x, (2, 0, 1))   # (T, B, F)
    finals = []
    for layer in range(num_layers):
        wih_f, whh_f, b_f = params["lstm"][2 * layer + 0]
        wih_b, whh_b, b_b = params["lstm"][2 * layer + 1]
        seq_f, hf = _lstm_dir_ref(layer_in, wih_f, whh_f, b_f, reverse=False)
        seq_b, hb = _lstm_dir_ref(layer_in, wih_b, whh_b, b_b, reverse=True)
        layer_in = jnp.concatenate([seq_f, seq_b], axis=-1)
        finals.extend([hf, hb])
    feat = jnp.concatenate(finals, axis=-1)
    w1, b1, w2, b2 = params["mlp"]
    h = jnp.maximum(jnp.dot(feat, w1, precision=HIGHEST) + b1, 0.0)
    return jnp.dot(h, w2, precision=HIGHEST) + b2


# ---------------------------------------------------------------------------
# Deterministic parameter init (PyTorch-style uniform(-1/sqrt(H), 1/sqrt(H)))
# Weights are stored gate-fused: wih (Din, 4H), whh (H, 4H), bias (1, 4H)
# with gate column order [i | f | o | g]; bias = b_ih + b_hh.
# ---------------------------------------------------------------------------
def init_params(key, *, input_size, hidden, num_layers, num_classes, mlp_hidden=256):
    params = {"lstm": []}
    bound = 1.0 / math.sqrt(hidden)
    G = 4 * hidden
    for layer in range(num_layers):
        d_in = input_size if layer == 0 else 2 * hidden
        for _direction in range(2):
            key, k0, k1, k2, k3 = jax.random.split(key, 5)
            wih = jax.random.uniform(k0, (d_in, G), jnp.float32, -bound, bound)
            whh = jax.random.uniform(k1, (hidden, G), jnp.float32, -bound, bound)
            bias = (jax.random.uniform(k2, (1, G), jnp.float32, -bound, bound)
                    + jax.random.uniform(k3, (1, G), jnp.float32, -bound, bound))
            params["lstm"].append((wih, whh, bias))

    feat_dim = 2 * hidden * num_layers
    key, k0, k1, k2, k3 = jax.random.split(key, 5)
    b1_bound = 1.0 / math.sqrt(feat_dim)
    b2_bound = 1.0 / math.sqrt(mlp_hidden)
    w1 = jax.random.uniform(k0, (feat_dim, mlp_hidden), jnp.float32, -b1_bound, b1_bound)
    b1 = jax.random.uniform(k1, (1, mlp_hidden), jnp.float32, -b1_bound, b1_bound)
    w2 = jax.random.uniform(k2, (mlp_hidden, num_classes), jnp.float32, -b2_bound, b2_bound)
    b2 = jax.random.uniform(k3, (1, num_classes), jnp.float32, -b2_bound, b2_bound)
    params["mlp"] = (w1, b1, w2, b2)
    return params


# ---------------------------------------------------------------------------
if __name__ == "__main__":
    # Small shapes consistent with the module (input_size=64 fixed by nn.LSTM).
    BATCH, FEAT, T = 2, 64, 8
    HIDDEN, NUM_LAYERS, NUM_CLASSES = 32, 2, 10

    key = jax.random.PRNGKey(0)
    key, kx = jax.random.split(key)
    x = jax.random.normal(kx, (BATCH, FEAT, T), dtype=jnp.float32)
    lens = jnp.full((BATCH,), T, dtype=jnp.int32)  # unused (parity with torch)

    params = init_params(key, input_size=FEAT, hidden=HIDDEN,
                         num_layers=NUM_LAYERS, num_classes=NUM_CLASSES)

    fwd = jax.jit(
        lambda p, xx, ll: recurrent_melspect_classifier(
            p, xx, ll, hidden=HIDDEN, num_layers=NUM_LAYERS))
    logits = jax.block_until_ready(fwd(params, x, lens))

    assert logits.shape == (BATCH, NUM_CLASSES)

    ref = jax.block_until_ready(_forward_ref(params, x, num_layers=NUM_LAYERS))
    # Kernel uses bf16 MXU operands with f32 accumulation; reference is full f32.
    if not jnp.allclose(logits, ref, atol=5e-2, rtol=5e-2):
        raise AssertionError(
            f"Pallas result differs from reference; max abs diff = "
            f"{float(jnp.max(jnp.abs(logits - ref)))}")

    print("KERNEL_OK")
</pallas_src>

<mosaic_0001>
module attributes {stable_mosaic.version = 11 : i64} {
  func.func @kernel(%arg0: memref<16x32xbf16, #tpu.memory_space<vmem>>, %arg1: memref<16x32xbf16, #tpu.memory_space<vmem>>, %arg2: memref<64x128xbf16, #tpu.memory_space<vmem>>, %arg3: memref<32x128xbf16, #tpu.memory_space<vmem>>, %arg4: memref<1x128xf32, #tpu.memory_space<vmem>>, %arg5: memref<64x128xbf16, #tpu.memory_space<vmem>>, %arg6: memref<32x128xbf16, #tpu.memory_space<vmem>>, %arg7: memref<1x128xf32, #tpu.memory_space<vmem>>, %arg8: memref<2x64xf32, #tpu.memory_space<vmem>>, %arg9: memref<16x128xf32, #tpu.memory_space<vmem>>, %arg10: memref<16x128xf32, #tpu.memory_space<vmem>>) attributes {dimension_semantics = [], scalar_prefetch = 0 : i64, scratch_operands = 2 : i64, tpu.core_type = #tpu.core_type<tc>} {
    %c0 = arith.constant 0 : index
    %c0_0 = arith.constant 0 : index
    %0 = vector.load %arg0[%c0, %c0_0] : memref<16x32xbf16, #tpu.memory_space<vmem>>, vector<16x32xbf16>
    %c0_1 = arith.constant 0 : index
    %c0_2 = arith.constant 0 : index
    %1 = vector.load %arg2[%c0_1, %c0_2] : memref<64x128xbf16, #tpu.memory_space<vmem>>, vector<32x128xbf16>
    %cst = arith.constant dense<0.000000e+00> : vector<16x128xf32>
    %2 = tpu.matmul %0, %1, %cst {dimension_numbers = #tpu.dot_dimension_numbers<[1], [0], [0], [1], [0, 0, 1, 1], [], []>} : vector<16x32xbf16>, vector<32x128xbf16>, vector<16x128xf32> -> vector<16x128xf32>
    %c0_3 = arith.constant 0 : index
    %c0_4 = arith.constant 0 : index
    %3 = vector.load %arg1[%c0_3, %c0_4] : memref<16x32xbf16, #tpu.memory_space<vmem>>, vector<16x32xbf16>
    %c32 = arith.constant 32 : index
    %c0_5 = arith.constant 0 : index
    %4 = vector.load %arg2[%c32, %c0_5] : memref<64x128xbf16, #tpu.memory_space<vmem>>, vector<32x128xbf16>
    %cst_6 = arith.constant dense<0.000000e+00> : vector<16x128xf32>
    %5 = tpu.matmul %3, %4, %cst_6 {dimension_numbers = #tpu.dot_dimension_numbers<[1], [0], [0], [1], [0, 0, 1, 1], [], []>} : vector<16x32xbf16>, vector<32x128xbf16>, vector<16x128xf32> -> vector<16x128xf32>
    %6 = arith.addf %2, %5 : vector<16x128xf32>
    %c0_7 = arith.constant 0 : index
    %c0_8 = arith.constant 0 : index
    %7 = vector.load %arg4[%c0_7, %c0_8] : memref<1x128xf32, #tpu.memory_space<vmem>>, vector<1x128xf32>
    %8 = vector.broadcast %7 : vector<1x128xf32> to vector<16x128xf32>
    %9 = arith.addf %6, %8 : vector<16x128xf32>
    %c0_9 = arith.constant 0 : index
    %c0_10 = arith.constant 0 : index
    %10 = vector.load %arg9[%c0_9, %c0_10] : memref<16x128xf32, #tpu.memory_space<vmem>>, vector<16x128xf32>
    tpu.vector_store %arg9[%c0_9, %c0_10], %9 {strides = array<i32>} : memref<16x128xf32, #tpu.memory_space<vmem>>, vector<16x128xf32>,
    %c0_11 = arith.constant 0 : index
    %c0_12 = arith.constant 0 : index
    %11 = vector.load %arg0[%c0_11, %c0_12] : memref<16x32xbf16, #tpu.memory_space<vmem>>, vector<16x32xbf16>
    %c0_13 = arith.constant 0 : index
    %c0_14 = arith.constant 0 : index
    %12 = vector.load %arg5[%c0_13, %c0_14] : memref<64x128xbf16, #tpu.memory_space<vmem>>, vector<32x128xbf16>
    %cst_15 = arith.constant dense<0.000000e+00> : vector<16x128xf32>
    %13 = tpu.matmul %11, %12, %cst_15 {dimension_numbers = #tpu.dot_dimension_numbers<[1], [0], [0], [1], [0, 0, 1, 1], [], []>} : vector<16x32xbf16>, vector<32x128xbf16>, vector<16x128xf32> -> vector<16x128xf32>
    %c0_16 = arith.constant 0 : index
    %c0_17 = arith.constant 0 : index
    %14 = vector.load %arg1[%c0_16, %c0_17] : memref<16x32xbf16, #tpu.memory_space<vmem>>, vector<16x32xbf16>
    %c32_18 = arith.constant 32 : index
    %c0_19 = arith.constant 0 : index
    %15 = vector.load %arg5[%c32_18, %c0_19] : memref<64x128xbf16, #tpu.memory_space<vmem>>, vector<32x128xbf16>
    %cst_20 = arith.constant dense<0.000000e+00> : vector<16x128xf32>
    %16 = tpu.matmul %14, %15, %cst_20 {dimension_numbers = #tpu.dot_dimension_numbers<[1], [0], [0], [1], [0, 0, 1, 1], [], []>} : vector<16x32xbf16>, vector<32x128xbf16>, vector<16x128xf32> -> vector<16x128xf32>
    %17 = arith.addf %13, %16 : vector<16x128xf32>
    %c0_21 = arith.constant 0 : index
    %c0_22 = arith.constant 0 : index
    %18 = vector.load %arg7[%c0_21, %c0_22] : memref<1x128xf32, #tpu.memory_space<vmem>>, vector<1x128xf32>
    %19 = vector.broadcast %18 : vector<1x128xf32> to vector<16x128xf32>
    %20 = arith.addf %17, %19 : vector<16x128xf32>
    %c0_23 = arith.constant 0 : index
    %c0_24 = arith.constant 0 : index
    %21 = vector.load %arg10[%c0_23, %c0_24] : memref<16x128xf32, #tpu.memory_space<vmem>>, vector<16x128xf32>
    tpu.vector_store %arg10[%c0_23, %c0_24], %20 {strides = array<i32>} : memref<16x128xf32, #tpu.memory_space<vmem>>, vector<16x128xf32>,
    %c0_25 = arith.constant 0 : index
    %c0_26 = arith.constant 0 : index
    %22 = vector.load %arg3[%c0_25, %c0_26] : memref<32x128xbf16, #tpu.memory_space<vmem>>, vector<32x128xbf16>
    %c0_27 = arith.constant 0 : index
    %c0_28 = arith.constant 0 : index
    %23 = vector.load %arg6[%c0_27, %c0_28] : memref<32x128xbf16, #tpu.memory_space<vmem>>, vector<32x128xbf16>
    %cst_29 = arith.constant 0.000000e+00 : f32
    %24 = vector.broadcast %cst_29 : f32 to vector<2x32xf32>
    %c0_i32 = arith.constant 0 : i32
    %c8_i32 = arith.constant 8 : i32
    %25 = arith.addi %c0_i32, %c8_i32 : i32
    %c1_i32 = arith.constant 1 : i32
    %26:4 = scf.for %arg11 = %c0_i32 to %25 step %c1_i32 iter_args(%arg12 = %24, %arg13 = %24, %arg14 = %24, %arg15 = %24) -> (vector<2x32xf32>, vector<2x32xf32>, vector<2x32xf32>, vector<2x32xf32>)  : i32 {
      %c7_i32 = arith.constant 7 : i32
      %29 = arith.subi %c7_i32, %arg11 : i32
      %c2_i32 = arith.constant 2 : i32
      %30 = arith.muli %arg11, %c2_i32 : i32
      %31 = arith.index_cast %30 : i32 to index
      %c0_35 = arith.constant 0 : index
      %32 = vector.load %arg9[%31, %c0_35] : memref<16x128xf32, #tpu.memory_space<vmem>>, vector<2x128xf32>
      %33 = arith.truncf %arg12 : vector<2x32xf32> to vector<2x32xbf16>
      %cst_36 = arith.constant dense<0.000000e+00> : vector<2x128xf32>
      %34 = tpu.matmul %33, %22, %cst_36 {dimension_numbers = #tpu.dot_dimension_numbers<[1], [0], [0], [1], [0, 0, 1, 1], [], []>} : vector<2x32xbf16>, vector<32x128xbf16>, vector<2x128xf32> -> vector<2x128xf32>
      %35 = arith.addf %32, %34 : vector<2x128xf32>
      %36 = vector.extract_strided_slice %35 {offsets = [0, 0], sizes = [2, 96], strides = [1, 1]} : vector<2x128xf32> to vector<2x96xf32>
      %37 = arith.negf %36 : vector<2x96xf32>
      %38 = math.exp %37 : vector<2x96xf32>
      %cst_37 = arith.constant 1.000000e+00 : f32
      %39 = vector.broadcast %cst_37 : f32 to vector<2x96xf32>
      %40 = arith.addf %39, %38 : vector<2x96xf32>
      %41 = arith.divf %39, %40 : vector<2x96xf32>
      %42 = vector.extract_strided_slice %41 {offsets = [0, 0], sizes = [2, 32], strides = [1, 1]} : vector<2x96xf32> to vector<2x32xf32>
      %43 = vector.extract_strided_slice %41 {offsets = [0, 32], sizes = [2, 32], strides = [1, 1]} : vector<2x96xf32> to vector<2x32xf32>
      %44 = vector.extract_strided_slice %41 {offsets = [0, 64], sizes = [2, 32], strides = [1, 1]} : vector<2x96xf32> to vector<2x32xf32>
      %45 = vector.extract_strided_slice %35 {offsets = [0, 96], sizes = [2, 32], strides = [1, 1]} : vector<2x128xf32> to vector<2x32xf32>
      %46 = math.tanh %45 : vector<2x32xf32>
      %47 = arith.mulf %43, %arg13 : vector<2x32xf32>
      %48 = arith.mulf %42, %46 : vector<2x32xf32>
      %49 = arith.addf %47, %48 : vector<2x32xf32>
      %50 = math.tanh %49 : vector<2x32xf32>
      %51 = arith.mulf %44, %50 : vector<2x32xf32>
      %c2_i32_38 = arith.constant 2 : i32
      %52 = arith.muli %29, %c2_i32_38 : i32
      %53 = arith.index_cast %52 : i32 to index
      %c0_39 = arith.constant 0 : index
      %54 = vector.load %arg10[%53, %c0_39] : memref<16x128xf32, #tpu.memory_space<vmem>>, vector<2x128xf32>
      %55 = arith.truncf %arg14 : vector<2x32xf32> to vector<2x32xbf16>
      %cst_40 = arith.constant dense<0.000000e+00> : vector<2x128xf32>
      %56 = tpu.matmul %55, %23, %cst_40 {dimension_numbers = #tpu.dot_dimension_numbers<[1], [0], [0], [1], [0, 0, 1, 1], [], []>} : vector<2x32xbf16>, vector<32x128xbf16>, vector<2x128xf32> -> vector<2x128xf32>
      %57 = arith.addf %54, %56 : vector<2x128xf32>
      %58 = vector.extract_strided_slice %57 {offsets = [0, 0], sizes = [2, 96], strides = [1, 1]} : vector<2x128xf32> to vector<2x96xf32>
      %59 = arith.negf %58 : vector<2x96xf32>
      %60 = math.exp %59 : vector<2x96xf32>
      %cst_41 = arith.constant 1.000000e+00 : f32
      %61 = vector.broadcast %cst_41 : f32 to vector<2x96xf32>
      %62 = arith.addf %61, %60 : vector<2x96xf32>
      %63 = arith.divf %61, %62 : vector<2x96xf32>
      %64 = vector.extract_strided_slice %63 {offsets = [0, 0], sizes = [2, 32], strides = [1, 1]} : vector<2x96xf32> to vector<2x32xf32>
      %65 = vector.extract_strided_slice %63 {offsets = [0, 32], sizes = [2, 32], strides = [1, 1]} : vector<2x96xf32> to vector<2x32xf32>
      %66 = vector.extract_strided_slice %63 {offsets = [0, 64], sizes = [2, 32], strides = [1, 1]} : vector<2x96xf32> to vector<2x32xf32>
      %67 = vector.extract_strided_slice %57 {offsets = [0, 96], sizes = [2, 32], strides = [1, 1]} : vector<2x128xf32> to vector<2x32xf32>
      %68 = math.tanh %67 : vector<2x32xf32>
      %69 = arith.mulf %65, %arg15 : vector<2x32xf32>
      %70 = arith.mulf %64, %68 : vector<2x32xf32>
      %71 = arith.addf %69, %70 : vector<2x32xf32>
      %72 = math.tanh %71 : vector<2x32xf32>
      %73 = arith.mulf %66, %72 : vector<2x32xf32>
      scf.yield %51, %49, %73, %71 : vector<2x32xf32>, vector<2x32xf32>, vector<2x32xf32>, vector<2x32xf32>
    }
    %c8_i32_30 = arith.constant 8 : i32
    %c0_31 = arith.constant 0 : index
    %c0_32 = arith.constant 0 : index
    %27 = vector.load %arg8[%c0_31, %c0_32] : memref<2x64xf32, #tpu.memory_space<vmem>>, vector<2x32xf32>
    tpu.vector_store %arg8[%c0_31, %c0_32], %26#0 {strides = array<i32>} : memref<2x64xf32, #tpu.memory_space<vmem>>, vector<2x32xf32>,
    %c0_33 = arith.constant 0 : index
    %c32_34 = arith.constant 32 : index
    %28 = vector.load %arg8[%c0_33, %c32_34] : memref<2x64xf32, #tpu.memory_space<vmem>>, vector<2x32xf32>
    tpu.vector_store %arg8[%c0_33, %c32_34], %26#2 {strides = array<i32>} : memref<2x64xf32, #tpu.memory_space<vmem>>, vector<2x32xf32>,
    return
  }
}

module attributes {stable_mosaic.version = 11 : i64} {
  func.func @kernel(%arg0: memref<16x64xf32, #tpu.memory_space<vmem>>, %arg1: memref<64x128xbf16, #tpu.memory_space<vmem>>, %arg2: memref<32x128xbf16, #tpu.memory_space<vmem>>, %arg3: memref<1x128xf32, #tpu.memory_space<vmem>>, %arg4: memref<64x128xbf16, #tpu.memory_space<vmem>>, %arg5: memref<32x128xbf16, #tpu.memory_space<vmem>>, %arg6: memref<1x128xf32, #tpu.memory_space<vmem>>, %arg7: memref<8x2x32xbf16, #tpu.memory_space<vmem>>, %arg8: memref<8x2x32xbf16, #tpu.memory_space<vmem>>, %arg9: memref<2x64xf32, #tpu.memory_space<vmem>>, %arg10: memref<16x128xf32, #tpu.memory_space<vmem>>, %arg11: memref<16x128xf32, #tpu.memory_space<vmem>>) attributes {dimension_semantics = [], scalar_prefetch = 0 : i64, scratch_operands = 2 : i64, tpu.core_type = #tpu.core_type<tc>} {
    %c0 = arith.constant 0 : index
    %c0_0 = arith.constant 0 : index
    %0 = vector.load %arg0[%c0, %c0_0] : memref<16x64xf32, #tpu.memory_space<vmem>>, vector<16x64xf32>
    %1 = arith.truncf %0 : vector<16x64xf32> to vector<16x64xbf16>
    %c0_1 = arith.constant 0 : index
    %c0_2 = arith.constant 0 : index
    %2 = vector.load %arg1[%c0_1, %c0_2] : memref<64x128xbf16, #tpu.memory_space<vmem>>, vector<64x128xbf16>
    %cst = arith.constant dense<0.000000e+00> : vector<16x128xf32>
    %3 = tpu.matmul %1, %2, %cst {dimension_numbers = #tpu.dot_dimension_numbers<[1], [0], [0], [1], [0, 0, 1, 1], [], []>} : vector<16x64xbf16>, vector<64x128xbf16>, vector<16x128xf32> -> vector<16x128xf32>
    %c0_3 = arith.constant 0 : index
    %c0_4 = arith.constant 0 : index
    %4 = vector.load %arg3[%c0_3, %c0_4] : memref<1x128xf32, #tpu.memory_space<vmem>>, vector<1x128xf32>
    %5 = vector.broadcast %4 : vector<1x128xf32> to vector<16x128xf32>
    %6 = arith.addf %3, %5 : vector<16x128xf32>
    %c0_5 = arith.constant 0 : index
    %c0_6 = arith.constant 0 : index
    %7 = vector.load %arg10[%c0_5, %c0_6] : memref<16x128xf32, #tpu.memory_space<vmem>>, vector<16x128xf32>
    tpu.vector_store %arg10[%c0_5, %c0_6], %6 {strides = array<i32>} : memref<16x128xf32, #tpu.memory_space<vmem>>, vector<16x128xf32>,
    %c0_7 = arith.constant 0 : index
    %c0_8 = arith.constant 0 : index
    %8 = vector.load %arg0[%c0_7, %c0_8] : memref<16x64xf32, #tpu.memory_space<vmem>>, vector<16x64xf32>
    %9 = arith.truncf %8 : vector<16x64xf32> to vector<16x64xbf16>
    %c0_9 = arith.constant 0 : index
    %c0_10 = arith.constant 0 : index
    %10 = vector.load %arg4[%c0_9, %c0_10] : memref<64x128xbf16, #tpu.memory_space<vmem>>, vector<64x128xbf16>
    %cst_11 = arith.constant dense<0.000000e+00> : vector<16x128xf32>
    %11 = tpu.matmul %9, %10, %cst_11 {dimension_numbers = #tpu.dot_dimension_numbers<[1], [0], [0], [1], [0, 0, 1, 1], [], []>} : vector<16x64xbf16>, vector<64x128xbf16>, vector<16x128xf32> -> vector<16x128xf32>
    %c0_12 = arith.constant 0 : index
    %c0_13 = arith.constant 0 : index
    %12 = vector.load %arg6[%c0_12, %c0_13] : memref<1x128xf32, #tpu.memory_space<vmem>>, vector<1x128xf32>
    %13 = vector.broadcast %12 : vector<1x128xf32> to vector<16x128xf32>
    %14 = arith.addf %11, %13 : vector<16x128xf32>
    %c0_14 = arith.constant 0 : index
    %c0_15 = arith.constant 0 : index
    %15 = vector.load %arg11[%c0_14, %c0_15] : memref<16x128xf32, #tpu.memory_space<vmem>>, vector<16x128xf32>
    tpu.vector_store %arg11[%c0_14, %c0_15], %14 {strides = array<i32>} : memref<16x128xf32, #tpu.memory_space<vmem>>, vector<16x128xf32>,
    %c0_16 = arith.constant 0 : index
    %c0_17 = arith.constant 0 : index
    %16 = vector.load %arg2[%c0_16, %c0_17] : memref<32x128xbf16, #tpu.memory_space<vmem>>, vector<32x128xbf16>
    %c0_18 = arith.constant 0 : index
    %c0_19 = arith.constant 0 : index
    %17 = vector.load %arg5[%c0_18, %c0_19] : memref<32x128xbf16, #tpu.memory_space<vmem>>, vector<32x128xbf16>
    %cst_20 = arith.constant 0.000000e+00 : f32
    %18 = vector.broadcast %cst_20 : f32 to vector<2x32xf32>
    %c0_i32 = arith.constant 0 : i32
    %c8_i32 = arith.constant 8 : i32
    %19 = arith.addi %c0_i32, %c8_i32 : i32
    %c1_i32 = arith.constant 1 : i32
    %20:4 = scf.for %arg12 = %c0_i32 to %19 step %c1_i32 iter_args(%arg13 = %18, %arg14 = %18, %arg15 = %18, %arg16 = %18) -> (vector<2x32xf32>, vector<2x32xf32>, vector<2x32xf32>, vector<2x32xf32>)  : i32 {
      %c7_i32 = arith.constant 7 : i32
      %23 = arith.subi %c7_i32, %arg12 : i32
      %c2_i32 = arith.constant 2 : i32
      %24 = arith.muli %arg12, %c2_i32 : i32
      %25 = arith.index_cast %24 : i32 to index
      %c0_25 = arith.constant 0 : index
      %26 = vector.load %arg10[%25, %c0_25] : memref<16x128xf32, #tpu.memory_space<vmem>>, vector<2x128xf32>
      %27 = arith.truncf %arg13 : vector<2x32xf32> to vector<2x32xbf16>
      %cst_26 = arith.constant dense<0.000000e+00> : vector<2x128xf32>
      %28 = tpu.matmul %27, %16, %cst_26 {dimension_numbers = #tpu.dot_dimension_numbers<[1], [0], [0], [1], [0, 0, 1, 1], [], []>} : vector<2x32xbf16>, vector<32x128xbf16>, vector<2x128xf32> -> vector<2x128xf32>
      %29 = arith.addf %26, %28 : vector<2x128xf32>
      %30 = vector.extract_strided_slice %29 {offsets = [0, 0], sizes = [2, 96], strides = [1, 1]} : vector<2x128xf32> to vector<2x96xf32>
      %31 = arith.negf %30 : vector<2x96xf32>
      %32 = math.exp %31 : vector<2x96xf32>
      %cst_27 = arith.constant 1.000000e+00 : f32
      %33 = vector.broadcast %cst_27 : f32 to vector<2x96xf32>
      %34 = arith.addf %33, %32 : vector<2x96xf32>
      %35 = arith.divf %33, %34 : vector<2x96xf32>
      %36 = vector.extract_strided_slice %35 {offsets = [0, 0], sizes = [2, 32], strides = [1, 1]} : vector<2x96xf32> to vector<2x32xf32>
      %37 = vector.extract_strided_slice %35 {offsets = [0, 32], sizes = [2, 32], strides = [1, 1]} : vector<2x96xf32> to vector<2x32xf32>
      %38 = vector.extract_strided_slice %35 {offsets = [0, 64], sizes = [2, 32], strides = [1, 1]} : vector<2x96xf32> to vector<2x32xf32>
      %39 = vector.extract_strided_slice %29 {offsets = [0, 96], sizes = [2, 32], strides = [1, 1]} : vector<2x128xf32> to vector<2x32xf32>
      %40 = math.tanh %39 : vector<2x32xf32>
      %41 = arith.mulf %37, %arg14 : vector<2x32xf32>
      %42 = arith.mulf %36, %40 : vector<2x32xf32>
      %43 = arith.addf %41, %42 : vector<2x32xf32>
      %44 = math.tanh %43 : vector<2x32xf32>
      %45 = arith.mulf %38, %44 : vector<2x32xf32>
      %c2_i32_28 = arith.constant 2 : i32
      %46 = arith.muli %23, %c2_i32_28 : i32
      %47 = arith.index_cast %46 : i32 to index
      %c0_29 = arith.constant 0 : index
      %48 = vector.load %arg11[%47, %c0_29] : memref<16x128xf32, #tpu.memory_space<vmem>>, vector<2x128xf32>
      %49 = arith.truncf %arg15 : vector<2x32xf32> to vector<2x32xbf16>
      %cst_30 = arith.constant dense<0.000000e+00> : vector<2x128xf32>
      %50 = tpu.matmul %49, %17, %cst_30 {dimension_numbers = #tpu.dot_dimension_numbers<[1], [0], [0], [1], [0, 0, 1, 1], [], []>} : vector<2x32xbf16>, vector<32x128xbf16>, vector<2x128xf32> -> vector<2x128xf32>
      %51 = arith.addf %48, %50 : vector<2x128xf32>
      %52 = vector.extract_strided_slice %51 {offsets = [0, 0], sizes = [2, 96], strides = [1, 1]} : vector<2x128xf32> to vector<2x96xf32>
      %53 = arith.negf %52 : vector<2x96xf32>
      %54 = math.exp %53 : vector<2x96xf32>
      %cst_31 = arith.constant 1.000000e+00 : f32
      %55 = vector.broadcast %cst_31 : f32 to vector<2x96xf32>
      %56 = arith.addf %55, %54 : vector<2x96xf32>
      %57 = arith.divf %55, %56 : vector<2x96xf32>
      %58 = vector.extract_strided_slice %57 {offsets = [0, 0], sizes = [2, 32], strides = [1, 1]} : vector<2x96xf32> to vector<2x32xf32>
      %59 = vector.extract_strided_slice %57 {offsets = [0, 32], sizes = [2, 32], strides = [1, 1]} : vector<2x96xf32> to vector<2x32xf32>
      %60 = vector.extract_strided_slice %57 {offsets = [0, 64], sizes = [2, 32], strides = [1, 1]} : vector<2x96xf32> to vector<2x32xf32>
      %61 = vector.extract_strided_slice %51 {offsets = [0, 96], sizes = [2, 32], strides = [1, 1]} : vector<2x128xf32> to vector<2x32xf32>
      %62 = math.tanh %61 : vector<2x32xf32>
      %63 = arith.mulf %59, %arg16 : vector<2x32xf32>
      %64 = arith.mulf %58, %62 : vector<2x32xf32>
      %65 = arith.addf %63, %64 : vector<2x32xf32>
      %66 = math.tanh %65 : vector<2x32xf32>
      %67 = arith.mulf %60, %66 : vector<2x32xf32>
      %68 = arith.truncf %45 : vector<2x32xf32> to vector<2x32xbf16>
      %69 = arith.index_cast %arg12 : i32 to index
      %c0_32 = arith.constant 0 : index
      %c0_33 = arith.constant 0 : index
      %70 = vector.load %arg7[%69, %c0_32, %c0_33] : memref<8x2x32xbf16, #tpu.memory_space<vmem>>, vector<1x2x32xbf16>
      %71 = vector.shape_cast %70 : vector<1x2x32xbf16> to vector<2x32xbf16>
      %72 = vector.shape_cast %68 : vector<2x32xbf16> to vector<1x2x32xbf16>
      tpu.vector_store %arg7[%69, %c0_32, %c0_33], %72 {strides = array<i32>} : memref<8x2x32xbf16, #tpu.memory_space<vmem>>, vector<1x2x32xbf16>,
      %73 = arith.truncf %67 : vector<2x32xf32> to vector<2x32xbf16>
      %74 = arith.index_cast %23 : i32 to index
      %c0_34 = arith.constant 0 : index
      %c0_35 = arith.constant 0 : index
      %75 = vector.load %arg8[%74, %c0_34, %c0_35] : memref<8x2x32xbf16, #tpu.memory_space<vmem>>, vector<1x2x32xbf16>
      %76 = vector.shape_cast %75 : vector<1x2x32xbf16> to vector<2x32xbf16>
      %77 = vector.shape_cast %73 : vector<2x32xbf16> to vector<1x2x32xbf16>
      tpu.vector_store %arg8[%74, %c0_34, %c0_35], %77 {strides = array<i32>} : memref<8x2x32xbf16, #tpu.memory_space<vmem>>, vector<1x2x32xbf16>,
      scf.yield %45, %43, %67, %65 : vector<2x32xf32>, vector<2x32xf32>, vector<2x32xf32>, vector<2x32xf32>
    }
    %c8_i32_21 = arith.constant 8 : i32
    %c0_22 = arith.constant 0 : index
    %c0_23 = arith.constant 0 : index
    %21 = vector.load %arg9[%c0_22, %c0_23] : memref<2x64xf32, #tpu.memory_space<vmem>>, vector<2x32xf32>
    tpu.vector_store %arg9[%c0_22, %c0_23], %20#0 {strides = array<i32>} : memref<2x64xf32, #tpu.memory_space<vmem>>, vector<2x32xf32>,
    %c0_24 = arith.constant 0 : index
    %c32 = arith.constant 32 : index
    %22 = vector.load %arg9[%c0_24, %c32] : memref<2x64xf32, #tpu.memory_space<vmem>>, vector<2x32xf32>
    tpu.vector_store %arg9[%c0_24, %c32], %20#2 {strides = array<i32>} : memref<2x64xf32, #tpu.memory_space<vmem>>, vector<2x32xf32>,
    return
  }
}

module attributes {stable_mosaic.version = 11 : i64} {
  func.func @kernel(%arg0: memref<2x64xf32, #tpu.memory_space<vmem>>, %arg1: memref<2x64xf32, #tpu.memory_space<vmem>>, %arg2: memref<128x256xbf16, #tpu.memory_space<vmem>>, %arg3: memref<1x256xf32, #tpu.memory_space<vmem>>, %arg4: memref<256x10xbf16, #tpu.memory_space<vmem>>, %arg5: memref<1x10xf32, #tpu.memory_space<vmem>>, %arg6: memref<2x10xf32, #tpu.memory_space<vmem>>) attributes {dimension_semantics = [], scalar_prefetch = 0 : i64, scratch_operands = 0 : i64, tpu.core_type = #tpu.core_type<tc>} {
    %c0 = arith.constant 0 : index
    %c0_0 = arith.constant 0 : index
    %0 = vector.load %arg0[%c0, %c0_0] : memref<2x64xf32, #tpu.memory_space<vmem>>, vector<2x64xf32>
    %1 = arith.truncf %0 : vector<2x64xf32> to vector<2x64xbf16>
    %c0_1 = arith.constant 0 : index
    %c0_2 = arith.constant 0 : index
    %2 = vector.load %arg2[%c0_1, %c0_2] : memref<128x256xbf16, #tpu.memory_space<vmem>>, vector<64x256xbf16>
    %cst = arith.constant dense<0.000000e+00> : vector<2x256xf32>
    %3 = tpu.matmul %1, %2, %cst {dimension_numbers = #tpu.dot_dimension_numbers<[1], [0], [0], [1], [0, 0, 1, 1], [], []>} : vector<2x64xbf16>, vector<64x256xbf16>, vector<2x256xf32> -> vector<2x256xf32>
    %c0_3 = arith.constant 0 : index
    %c0_4 = arith.constant 0 : index
    %4 = vector.load %arg1[%c0_3, %c0_4] : memref<2x64xf32, #tpu.memory_space<vmem>>, vector<2x64xf32>
    %5 = arith.truncf %4 : vector<2x64xf32> to vector<2x64xbf16>
    %c64 = arith.constant 64 : index
    %c0_5 = arith.constant 0 : index
    %6 = vector.load %arg2[%c64, %c0_5] : memref<128x256xbf16, #tpu.memory_space<vmem>>, vector<64x256xbf16>
    %cst_6 = arith.constant dense<0.000000e+00> : vector<2x256xf32>
    %7 = tpu.matmul %5, %6, %cst_6 {dimension_numbers = #tpu.dot_dimension_numbers<[1], [0], [0], [1], [0, 0, 1, 1], [], []>} : vector<2x64xbf16>, vector<64x256xbf16>, vector<2x256xf32> -> vector<2x256xf32>
    %8 = arith.addf %3, %7 : vector<2x256xf32>
    %c0_7 = arith.constant 0 : index
    %c0_8 = arith.constant 0 : index
    %9 = vector.load %arg3[%c0_7, %c0_8] : memref<1x256xf32, #tpu.memory_space<vmem>>, vector<1x256xf32>
    %10 = vector.broadcast %9 : vector<1x256xf32> to vector<2x256xf32>
    %11 = arith.addf %8, %10 : vector<2x256xf32>
    %cst_9 = arith.constant 0.000000e+00 : f32
    %12 = vector.broadcast %cst_9 : f32 to vector<2x256xf32>
    %13 = arith.maximumf %11, %12 : vector<2x256xf32>
    %14 = arith.truncf %13 : vector<2x256xf32> to vector<2x256xbf16>
    %c0_10 = arith.constant 0 : index
    %c0_11 = arith.constant 0 : index
    %15 = vector.load %arg4[%c0_10, %c0_11] : memref<256x10xbf16, #tpu.memory_space<vmem>>, vector<256x10xbf16>
    %cst_12 = arith.constant dense<0.000000e+00> : vector<2x10xf32>
    %16 = tpu.matmul %14, %15, %cst_12 {dimension_numbers = #tpu.dot_dimension_numbers<[1], [0], [0], [1], [0, 0, 1, 1], [], []>} : vector<2x256xbf16>, vector<256x10xbf16>, vector<2x10xf32> -> vector<2x10xf32>
    %c0_13 = arith.constant 0 : index
    %c0_14 = arith.constant 0 : index
    %17 = vector.load %arg5[%c0_13, %c0_14] : memref<1x10xf32, #tpu.memory_space<vmem>>, vector<1x10xf32>
    %18 = vector.broadcast %17 : vector<1x10xf32> to vector<2x10xf32>
    %19 = arith.addf %16, %18 : vector<2x10xf32>
    %c0_15 = arith.constant 0 : index
    %c0_16 = arith.constant 0 : index
    %20 = vector.load %arg6[%c0_15, %c0_16] : memref<2x10xf32, #tpu.memory_space<vmem>>, vector<2x10xf32>
    tpu.vector_store %arg6[%c0_15, %c0_16], %19 {strides = array<i32>} : memref<2x10xf32, #tpu.memory_space<vmem>>, vector<2x10xf32>,
    return
  }
}

</mosaic_0001>

<bundles_post_ra>
// kernel: _lambda_.5
= control target key start
LH: loop header
LB: loop body
LE: loop exit
PB: predicated region body
PF: predicated region fallthrough
CT: control target
= control target key end

     0   :  { %v546_v2 = vmov 0   ;;  %vm85_vm0 = vcmask 523264   ;;  %s705_s0 = inlined_call_operand.vmem [shape: f32[2,64], index: 0, kind: input, shape index: {}]   ;;  %s706_s1 = inlined_call_operand.vmem [shape: f32[2,64], index: 1, kind: input, shape index: {}]   ;;  %s707_s2 = inlined_call_operand.vmem [shape: bf16[128,256], index: 2, kind: input, shape index: {}]   ;;  %s708_s3 = inlined_call_operand.vmem [shape: f32[1,256], index: 3, kind: input, shape index: {}]   ;;  %s709_s4 = inlined_call_operand.vmem [shape: bf16[256,10], index: 4, kind: input, shape index: {}]   ;;  %s710_s5 = inlined_call_operand.vmem [shape: f32[1,10], index: 5, kind: input, shape index: {}]   ;;  %s711_s6 = inlined_call_operand.hbm [shape: f32[2,10], index: 6, kind: output, shape index: {}]  }
   0x1   :  { %v482_v0 = vld [vmem:[%s707_s2 + $0x44] ss:$8 sps:$4 sm:$0xff]   ;;  %v484_v1 = vld [vmem:[%s707_s2 + $0x40] ss:$8 sps:$4 sm:$0xff]   ;;  %121 = vmatprep.mubr.bf16.mxu1 %v546_v2  ;;  %v485_v3 = vld [vmem:[%s707_s2 + $0x54] ss:$8 sps:$4 sm:$0xff]  }
   0x2   :  { %89 = vmatprep.subr.bf16.mxu1 %v482_v0  ;;  %v487_v4 = vld [vmem:[%s707_s2 + $0x50] ss:$8 sps:$4 sm:$0xff]   ;;  %v488_v5 = vld [vmem:[%s707_s2 + $0x64] ss:$8 sps:$4 sm:$0xff]   ;;  %v490_v6 = vld [vmem:[%s707_s2 + $0x60] ss:$8 sps:$4 sm:$0xff]  }
   0x3   :  { %90 = vmatpush1.bf16.msra.mxu1 %v484_v1  ;;  %v491_v7 = vld [vmem:[%s707_s2 + $0x74] ss:$8 sps:$4 sm:$0xff]   ;;  %v493_v8 = vld [vmem:[%s707_s2 + $0x70] ss:$8 sps:$4 sm:$0xff]   ;;  %v35_v9 = vld [vmem:[%s706_s1] sm:$0x3] }
   0x4   :  { %91 = vmatprep.subr.bf16.mxu1 %v485_v3  ;;  %v496_v10 = vld [vmem:[%s707_s2 + $0x4] ss:$8 sps:$4 sm:$0xff]   ;;  %v494_v12 = vld [vmem:[%s707_s2] ss:$8 sps:$4 sm:$0xff]   ;;  %v36_v14 = vpack.c.bf16 %v35_v9, %v35_v9  ;;  %v499_v15 = vld [vmem:[%s707_s2 + $0x14] ss:$8 sps:$4 sm:$0xff]  }
   0x5   :  { %v506_v11 = vld [vmem:[%s709_s4 + $0x40] sm:$0xff]   ;;  %v508_v16 = vld [vmem:[%s709_s4 + $0x48] sm:$0xff]   ;;  %v497_v17 = vld [vmem:[%s707_s2 + $0x10] ss:$8 sps:$4 sm:$0xff]  }
   0x6   :  { %v507_v13 = vld [vmem:[%s709_s4] sm:$0xff]   ;;  %458 = vmatprep.subr.bf16.mxu0 %v506_v11 }
   0x7   :  { %92 = vmatpush1.bf16.msra.mxu1 %v487_v4  ;;  %459 = vmatpush3.bf16.msra.mxu0 %v507_v13  ;;  %v502_v18 = vld [vmem:[%s707_s2 + $0x24] ss:$8 sps:$4 sm:$0xff]   ;;  %v500_v19 = vld [vmem:[%s707_s2 + $0x20] ss:$8 sps:$4 sm:$0xff]  }
   0x8   :  { %93 = vmatprep.subr.bf16.mxu1 %v488_v5  ;;  %460 = vmatprep.subr.bf16.mxu0 %v508_v16 }
   0xb   :  { %94 = vmatpush1.bf16.msra.mxu1 %v490_v6 }
   0xc   :  { %95 = vmatprep.subr.bf16.mxu1 %v491_v7 }
   0xf   :  { %96 = vmatpush1.bf16.msra.mxu1 %v493_v8 }
  0x10   :  { %173 = vmatprep.subr.bf16.mxu1 %v496_v10 }
  0x12   :  { %431 = vmatmul.mubr.msk.bf16.vlgmr.msra.gmra.mrb[0].mxu1 %vm85_vm0, %v36_v14 }
  0x13   :  { %174 = vmatpush1.bf16.msra.mxu1 %v494_v12  ;;  %205 = vmatprep.mubr.bf16.mxu1 %v546_v2 }
  0x14   :  { %175 = vmatprep.subr.bf16.mxu1 %v499_v15 }
  0x17   :  { %176 = vmatpush1.bf16.msra.mxu1 %v497_v17 }
  0x18   :  { %11 = vsyncpa [#allocation3], 0  ;;  %177 = vmatprep.subr.bf16.mxu1 %v502_v18  ;;  %v505_v20 = vld [vmem:[%s707_s2 + $0x34] ss:$8 sps:$4 sm:$0xff]   ;;  %v503_v21 = vld [vmem:[%s707_s2 + $0x30] ss:$8 sps:$4 sm:$0xff]   ;;  %v216_v41 = vlaneseq }
  0x19   :  { %v25_v22 = vld [vmem:[%s705_s0] sm:$0x3]  ;;  %v509_v24 = vld [vmem:[%s709_s4 + $0x8] sm:$0xff]   ;;  %v510_v25 = vld [vmem:[%s709_s4 + $0x50] sm:$0xff]   ;;  %s547_s15 = smov [#allocation2]   ;;  %vm407_vm1 = vcmask 74752  }
  0x1a   :  { %v26_v23 = vpack.c.bf16 %v25_v22, %v25_v22  ;;  %461 = vmatpush3.bf16.msra.mxu0 %v509_v24  ;;  %v511_v26 = vld [vmem:[%s709_s4 + $0x10] sm:$0xff]   ;;  %v512_v27 = vld [vmem:[%s709_s4 + $0x58] sm:$0xff]   ;;  %v514_v29 = vld [vmem:[%s709_s4 + $0x60] sm:$0xff]   ;;  %v217_v42 = vshrl.u32 %v216_v41, 7  ;;  %s415_s16 = sshll.u32 %s547_s15, 4  ;;  %s416_s16 = int_to_ptr.vmem [resolvable:$true] %s415_s16 }
  0x1b   :  { %178 = vmatpush1.bf16.msra.mxu1 %v500_v19  ;;  %462 = vmatprep.subr.bf16.mxu0 %v510_v25  ;;  %v513_v28 = vld [vmem:[%s709_s4 + $0x18] sm:$0xff]   ;;  %v515_v30 = vld [vmem:[%s709_s4 + $0x20] sm:$0xff]   ;;  %v516_v31 = vld [vmem:[%s709_s4 + $0x68] sm:$0xff]   ;;  %s522_s17 = scalar_lea.vmem %s416_s16, 32  ;;  %p527_p1 = scmp.lt.s32.totalorder %s416_s16, %s416_s16 }
  0x1c   :  { %179 = vmatprep.subr.bf16.mxu1 %v505_v20  ;;  %v517_v32 = vld [vmem:[%s709_s4 + $0x28] sm:$0xff]   ;;  %v518_v33 = vld [vmem:[%s709_s4 + $0x70] sm:$0xff]   ;;  %v520_v35 = vld [vmem:[%s709_s4 + $0x78] sm:$0xff]   ;;  %v218_v43 = vsub.s32 0, %v217_v42  ;;  %v222_v45 = vsub.s32 1, %v217_v42  ;;  %p523_p0 = scmp.ne.s32.totalorder %s416_s16, %s522_s17  ;;  %p528_p2 = scmp.lt.s32.totalorder %s522_s17, %s522_s17 }
  0x1d   :  { %v519_v34 = vld [vmem:[%s709_s4 + $0x30] sm:$0xff]   ;;  %v521_v36 = vld [vmem:[%s709_s4 + $0x38] sm:$0xff]   ;;  %v214_v44 = vld [vmem:[%s708_s3] sm:$0x3] }
  0x1e   :  { %463 = vmatpush3.bf16.msra.mxu0 %v511_v26  ;;  %v219_v46 = vrot.slane %v214_v44, %v218_v43  ;;  %v223_v48 = vrot.slane %v214_v44, %v222_v45  ;;  %v441_v61 = vld [vmem:[%s710_s5] ss:$0 sm:$0xff]  ;;  %p529_p3 = por %p528_p2, %p527_p1 }
  0x1f   :  { %180 = vmatpush1.bf16.msra.mxu1 %v503_v21  ;;  %464 = vmatprep.subr.bf16.mxu0 %v512_v27 }
  0x20   :  { %p530_p4 = pnand %p529_p3, %p523_p0 }
  0x22   :  { %440 = vmatmul.mubr.msk.bf16.vlgmr.msra.gmra.mrb[4].mxu1 %vm85_vm0, %v26_v23  ;;  %465 = vmatpush3.bf16.msra.mxu0 %v513_v28 }
  0x23   :  { %466 = vmatprep.subr.bf16.mxu0 %v514_v29 }
  0x26   :  { %467 = vmatpush3.bf16.msra.mxu0 %v515_v30 }
  0x27   :  { %468 = vmatprep.subr.bf16.mxu0 %v516_v31 }
  0x2a   :  { %469 = vmatpush3.bf16.msra.mxu0 %v517_v32 }
  0x2b   :  { %470 = vmatprep.subr.bf16.mxu0 %v518_v33 }
  0x2e   :  { %471 = vmatpush3.bf16.msra.mxu0 %v519_v34 }
  0x2f   :  { %472 = vmatprep.subr.bf16.mxu0 %v520_v35 }
  0x32   :  { %473 = vmatpush3.bf16.msra.mxu0 %v521_v36 }
  0xe5   :  { %v123_v37 = vpop.f32.mrb[0].mxu1 }
  0xe6   :  { %v125_v38 = vpop.f32.mrb[1].mxu1 }
  0xe7   :  { %v127_v39 = vpop.f32.mrb[2].mxu1 }
  0xe8   :  { %v128_v40 = vpop.f32.mrb[3].mxu1 }
  0xf5   :  { %v207_v47 = vpop.f32.mrb[4].mxu1 }
  0xf6   :  { %v208_v49 = vadd.f32 %v207_v47, %v123_v37  ;;  %v209_v50 = vpop.f32.mrb[5].mxu1 }
  0xf7   :  { %v210_v51 = vadd.f32 %v209_v50, %v125_v38  ;;  %v211_v52 = vpop.f32.mrb[6].mxu1 }
  0xf8   :  { %v226_v53 = vadd.f32 %v219_v46, %v208_v49  ;;  %v212_v54 = vpop.f32.mrb[7].mxu1 }
  0xf9   :  { %v227_v55 = vadd.f32 %v223_v48, %v210_v51 }
  0xfa   :  { %v228_v56 = vmax.f32 %v226_v53, 0.0 }
  0xfb   :  { %v229_v57 = vmax.f32 %v227_v55, 0.0 }
  0xfc   :  { %v230_v59 = vpack.c.bf16 %v228_v56, %v228_v56 }
  0xfd   :  { %v231_v58 = vpack.c.bf16 %v229_v57, %v229_v57 }
  0xff   :  { %399 = vmatprep.mubr.bf16.mxu0 %v231_v58 }
 0x100   :  { %400 = vmatmul.mubr.bf16.vlgmr.msra.gmra.mrb[0].mxu0 %v230_v59 }
 0x1d3   :  { %v474_v60 = vpop.f32.mrb[0].mxu0 }
 0x1d4   :  { %v475_v62 = vpop.f32.mrb[1].mxu0 }
 0x1d5   :  { %v476_v63 = vadd.f32 %v475_v62, %v474_v60  ;;  %v477_v0 = vpop.f32.mrb[2].mxu0 }
 0x1d6   :  { %v478_v1 = vpop.f32.mrb[3].mxu0 }
 0x1d7   :  { %v402_v2 = vadd.f32 %v476_v63, %v441_v61 }
 0x1d9   :  { %408 = vst.msk [vmem:[#allocation2] sm:$0x3] %vm407_vm1, %v402_v2 }
 0x1da   :  { %533 = shalt.err (!%p530_p4)
}
 0x1db   :  { %s534_s5 = scalar_lea.hbm %s711_s6, 32 }
 0x1dc   :  { %p535_p5 = scmp.ne.s32.totalorder %s711_s6, %s534_s5  ;;  %p538_p6 = scmp.lt.u32.totalorder %s534_s5, %s711_s6 }
 0x1de   :  { %p540_p7 = pnand %p538_p6, %p535_p5 }
 0x1e0   :  { %543 = shalt.err (!%p540_p7)
}
 0x1e1   :  { %418 = dma.vmem_to_hbm [thread:$0]  %s416_s16, 32, %s711_s6, [#allocation3]  }
 0x1e2   :  { %544 = dma.done.wait [#allocation3], 32  }
 0x1e3   :  { %545 = vsyncadd [#allocation3], 4294967264 }
 0x1e4   :  { %422 = vsyncpa [#allocation3], 1 }

// kernel: _lambda_.3
= control target key start
LH: loop header
LB: loop body
LE: loop exit
PB: predicated region body
PF: predicated region fallthrough
CT: control target
= control target key end

     0   :  { %v682_v0 = vmov 0.0   ;;  %vm683_vm0 = vmmov 0   ;;  %vm72_vm1 = vcmask 523264   ;;  %v817_v34 = vmov 0.0   ;;  %s888_s7 = inlined_call_operand.vmem [shape: bf16[8,2,32], index: 7, kind: output, shape index: {0}]   ;;  %s889_s8 = inlined_call_operand.vmem [shape: bf16[8,2,32], index: 8, kind: output, shape index: {1}]   ;;  %s890_s9 = inlined_call_operand.vmem [shape: f32[2,64], index: 9, kind: output, shape index: {2}]   ;;  %s891_s1 = inlined_call_operand.vmem [shape: bf16[64,128], index: 1, kind: input, shape index: {}]   ;;  %s892_s4 = inlined_call_operand.vmem [shape: bf16[64,128], index: 4, kind: input, shape index: {}]   ;;  %s893_s0 = inlined_call_operand.vmem [shape: f32[16,64], index: 0, kind: input, shape index: {}]   ;;  %s894_s2 = inlined_call_operand.vmem [shape: bf16[32,128], index: 2, kind: input, shape index: {}]   ;;  %s895_s5 = inlined_call_operand.vmem [shape: bf16[32,128], index: 5, kind: input, shape index: {}]   ;;  %s896_s3 = inlined_call_operand.vmem [shape: f32[1,128], index: 3, kind: input, shape index: {}]   ;;  %s897_s6 = inlined_call_operand.vmem [shape: f32[1,128], index: 6, kind: input, shape index: {}]  }
   0x1   :  { %529 = vmatprep.subr.bf16.mxu0 %v682_v0  ;;  %541 = vmatprep.subr.bf16.mxu1 %v682_v0  ;;  %v618_v1 = vld [vmem:[%s891_s1] sm:$0xff]   ;;  %v620_v3 = vld [vmem:[%s891_s1 + $0x8] sm:$0xff]   ;;  %v622_v5 = vld [vmem:[%s891_s1 + $0x10] sm:$0xff]   ;;  %v819_v35 = vmov 0.0   ;;  %v821_v36 = vmov 0.0   ;;  %v823_v37 = vmov 0.0  }
   0x2   :  { %v619_v2 = vld [vmem:[%s892_s4] sm:$0xff]   ;;  %537 = vmatprep.mubr.msk.bf16.mxu0 %vm683_vm0, %v682_v0  ;;  %549 = vmatprep.mubr.msk.bf16.mxu1 %vm683_vm0, %v682_v0  ;;  %v621_v4 = vld [vmem:[%s892_s4 + $0x8] sm:$0xff]   ;;  %v623_v6 = vld [vmem:[%s892_s4 + $0x10] sm:$0xff]  }
   0x3   :  { %530 = vmatpush3.bf16.msra.mxu0 %v618_v1  ;;  %542 = vmatpush3.bf16.msra.mxu1 %v619_v2  ;;  %v624_v7 = vld [vmem:[%s891_s1 + $0x18] sm:$0xff]   ;;  %v30_v8 = vld [vmem:[%s893_s0] sm:$0xff]  ;;  %v31_v9 = vld [vmem:[%s893_s0 + $0x8] sm:$0xff] }
   0x4   :  { %531 = vmatprep.subr.bf16.mxu0 %v682_v0  ;;  %543 = vmatprep.subr.bf16.mxu1 %v682_v0  ;;  %v625_v10 = vld [vmem:[%s892_s4 + $0x18] sm:$0xff]   ;;  %v32_v11 = vpack.c.bf16 %v31_v9, %v30_v8  ;;  %v774_v12 = vld [vmem:[%s894_s2] sm:$0xf]  ;;  %v779_v13 = vld [vmem:[%s894_s2 + $0x4] sm:$0xf] }
   0x5   :  { %v784_v14 = vld [vmem:[%s894_s2 + $0x8] sm:$0xf]  ;;  %v789_v15 = vld [vmem:[%s894_s2 + $0xc] sm:$0xf]  ;;  %v794_v16 = vld [vmem:[%s895_s5] sm:$0xf] }
   0x6   :  { %v799_v17 = vld [vmem:[%s895_s5 + $0x4] sm:$0xf]  ;;  %v804_v18 = vld [vmem:[%s895_s5 + $0x8] sm:$0xf]  ;;  %v809_v19 = vld [vmem:[%s895_s5 + $0xc] sm:$0xf] }
   0x7   :  { %532 = vmatpush3.bf16.msra.mxu0 %v620_v3  ;;  %544 = vmatpush3.bf16.msra.mxu1 %v621_v4  ;;  %v491_v20 = vld [vmem:[%s896_s3] ss:$0 sm:$0xff]  ;;  %s825_s3 = smov 0  }
   0x8   :  { %533 = vmatprep.subr.bf16.mxu0 %v682_v0  ;;  %545 = vmatprep.subr.bf16.mxu1 %v682_v0  ;;  %v497_v21 = vld [vmem:[%s897_s6] ss:$0 sm:$0xff] }
   0xb   :  { %534 = vmatpush3.bf16.msra.mxu0 %v622_v5  ;;  %546 = vmatpush3.bf16.msra.mxu1 %v623_v6 }
   0xc   :  { %535 = vmatprep.subr.bf16.mxu0 %v682_v0  ;;  %547 = vmatprep.subr.bf16.mxu1 %v682_v0 }
   0xf   :  { %536 = vmatpush3.bf16.msra.mxu0 %v624_v7  ;;  %548 = vmatpush3.bf16.msra.mxu1 %v625_v10 }
  0x12   :  { %538 = vmatmul.mubr.msk.bf16.vlgmr.msra.gmra.mrb[0].mxu0 %vm72_vm1, %v32_v11  ;;  %550 = vmatmul.mubr.msk.bf16.vlgmr.msra.gmra.mrb[0].mxu1 %vm72_vm1, %v32_v11 }
  0xe5   :  { %v110_v22 = vpop.f32.mrb[0].mxu0  ;;  %v198_v24 = vpop.f32.mrb[0].mxu1 }
  0xe6   :  { %v111_v23 = vadd.f32 %v491_v20, %v110_v22  ;;  %v539_v25 = vpop.f32.mrb[1].mxu0  ;;  %v199_v26 = vadd.f32 %v497_v21, %v198_v24  ;;  %v551_v27 = vpop.f32.mrb[1].mxu1 }
  0xe7   :  { %v113_v28 = vpop.f32.mrb[2].mxu0  ;;  %v201_v30 = vpop.f32.mrb[2].mxu1 }
  0xe8   :  { %117 = vst [vmem:[#allocation2] sm:$0xff] %v111_v23  ;;  %v114_v29 = vadd.f32 %v491_v20, %v113_v28  ;;  %v540_v31 = vpop.f32.mrb[3].mxu0  ;;  %205 = vst [vmem:[#allocation3] sm:$0xff] %v199_v26  ;;  %v202_v32 = vadd.f32 %v497_v21, %v201_v30  ;;  %v552_v33 = vpop.f32.mrb[3].mxu1 }
  0xea   :  { %118 = vst [vmem:[#allocation2 + $0x8] sm:$0xff] %v114_v29  ;;  %206 = vst [vmem:[#allocation3 + $0x8] sm:$0xff] %v202_v32 }
  0xeb LB: > { %v504_v38 = vcombine.low %v774_v12, %v779_v13  ;;  %v684_v39 = vmov 0.0   ;;  %v509_v40 = vcombine.low %v794_v16, %v799_v17  ;;  %v229_v41 = vpack.c.bf16 %v676_v37, %v676_v37  ;;  %s685_s5 = smov 64   ;;  %s503_s6 = sshll.u32 %s680_s3, 1  ;;  %s680_s3 = sphi %s825_s3, %s220_s3   ;;  %v676_v37 = vphi %v823_v37, %v899_v37   ;;  %v672_v36 = vphi %v821_v36, %v307_v36   ;;  %v668_v35 = vphi %v819_v35, %v898_v35   ;;  %v664_v34 = vphi %v817_v34, %v394_v34  }
  0xec   : > { %553 = vmatprep.subr.bf16.mxu0 %v684_v39  ;;  %561 = vmatprep.subr.bf16.mxu1 %v684_v39  ;;  %v505_v42 = vcombine.low %v784_v14, %v789_v15  ;;  %v510_v43 = vcombine.low %v804_v18, %v809_v19  ;;  %v317_v44 = vpack.c.bf16 %v668_v35, %v668_v35  ;;  %vm686_vm2 = vmmov 0   ;;  %s225_s24 = ssub.s32 7, %s680_s3  ;;  %s227_s26 = scalar_lea.vmem [#allocation2], %s503_s6 }
  0xed   : > { %554 = vmatpush3.bf16.msra.mxu0 %v504_v38  ;;  %562 = vmatpush3.bf16.msra.mxu1 %v509_v40  ;;  %vm245_vm3 = vcmask 261120   ;;  %s508_s25 = sshll.u32 %s225_s24, 1  ;;  %s687_s28 = smov 32   ;;  %v688_v23 = vmov 1966171168   ;;  %v406_v25 = vlaneseq  ;;  %vm421_vm4 = vcmask 253952  }
  0xee   : > { %555 = vmatprep.subr.bf16.mxu0 %v684_v39  ;;  %231 = vrot.lane.b32.xlu0 %v229_v41, %s685_s5  ;;  %s315_s27 = scalar_lea.vmem [#allocation3], %s508_s25  ;;  %v404_v24 = vunpack.c.l.s4 %v688_v23  ;;  %s420_s30 = scalar_lea.vmem %s888_s7, %s680_s3 }
  0xef   : > { %557 = vmatprep.mubr.msk.bf16.mxu0 %vm686_vm2, %v684_v39  ;;  %563 = vmatprep.subr.bf16.mxu1 %v684_v39  ;;  %v407_v27 = vshrl.u32 %v406_v25, 7  ;;  %s442_s11 = scalar_lea.vmem %s889_s8, %s225_s24  ;;  %s220_s3 = sadd.s32 1, %s680_s3  }
  0xf0   : > { %565 = vmatprep.mubr.msk.bf16.mxu1 %vm686_vm2, %v684_v39  ;;  %v405_v26 = vunpack.c.0.s8 %v404_v24  ;;  %p217_p0 = scmp.ge.s32.totalorder %s220_s3, 8  }
  0xf1   : > { %556 = vmatpush3.bf16.msra.mxu0 %v505_v42  ;;  %564 = vmatpush3.bf16.msra.mxu1 %v510_v43  ;;  %v228_v47 = vld [vmem:[%s227_s26] sm:$0x3]  ;;  %s689_s4 = smov (%p217_p0), 64   ;;  %s690_s12 = smov (%p217_p0), 96   ;;  %vm448_vm5 = vcmask (%p217_p0), 254976   ;;  %vm454_vm6 = vcmask (%p217_p0), 517376  }
  0xf2   : > { %319 = vrot.lane.b32.xlu0 %v317_v44, %s685_s5  ;;  %v316_v52 = vld [vmem:[%s315_s27] sm:$0x3]  ;;  %v408_v29 = vsub.s32 %v405_v26, %v407_v27 }
 0x160   : > { %v232_v45 = vpop.permute.xlu0 %231 }
 0x161   : > { %558 = vmatmul.mubr.msk.bf16.vlgmr.msra.gmra.mrb[0].mxu0 %vm245_vm3, %v232_v45 }
 0x164   : > { %v320_v46 = vpop.permute.xlu0 %319 }
 0x165   : > { %566 = vmatmul.mubr.msk.bf16.vlgmr.msra.gmra.mrb[0].mxu1 %vm245_vm3, %v320_v46 }
 0x234   : > { %v283_v48 = vpop.f32.mrb[0].mxu0 }
 0x235   : > { %v289_v49 = vadd.f32 %v283_v48, %v228_v47  ;;  %v559_v50 = vpop.f32.mrb[1].mxu0 }
 0x236   : > { %v286_v51 = vpop.f32.mrb[2].mxu0 }
 0x237   : > { %626 = vtanh.f32 %v289_v49  ;;  %v560_v53 = vpop.f32.mrb[3].mxu0  ;;  %v507_v61 = vmul.f32 -1.442695, %v289_v49 }
 0x238   : > { %v370_v54 = vpop.f32.mrb[0].mxu1 }
 0x239   : > { %v376_v55 = vadd.f32 %v370_v54, %v316_v52  ;;  %v567_v56 = vpop.f32.mrb[1].mxu1 }
 0x23a   : > { %v373_v57 = vpop.f32.mrb[2].mxu1 }
 0x23b   : > { %628 = vtanh.f32 %v376_v55  ;;  %v568_v58 = vpop.f32.mrb[3].mxu1  ;;  %v512_v62 = vmul.f32 -1.442695, %v376_v55 }
 0x23c   : > { %630 = vpow2.f32 %v507_v61 }
 0x23d   : > { %632 = vpow2.f32 %v512_v62 }
 0x241   : > { %v627_v59 = vpop.eup %626 }
 0x242   : > { %299 = vrot.lane.b32.xlu1 %v627_v59, %s687_s28 }
 0x245   : > { %v629_v60 = vpop.eup %628 }
 0x246   : > { %386 = vrot.lane.b32.xlu1 %v629_v60, %s687_s28  ;;  %v631_v63 = vpop.eup %630 }
 0x247   : > { %v293_v0 = vadd.f32 1.0, %v631_v63  ;;  %v633_v1 = vpop.eup %632 }
 0x248   : > { %v380_v2 = vadd.f32 1.0, %v633_v1 }
 0x249   : > { %634 = vrcp.f32 %v293_v0 }
 0x24a   : > { %636 = vrcp.f32 %v380_v2 }
 0x253   : > { %v635_v3 = vpop.eup %634 }
 0x254   : > { %v637_v6 = vpop.eup %636  ;;  %v297_v9 = vmul.f32 %v672_v36, %v635_v3 }
 0x255   : > { %v384_v11 = vmul.f32 %v664_v34, %v637_v6 }
 0x2b4   : > { %v300_v4 = vpop.permute.xlu1 %299 }
 0x2b5   : > { %v302_v5 = vmul.f32 %v635_v3, %v300_v4 }
 0x2b7   : > { %304 = vrot.lane.b32.xlu0 %v302_v5, %s687_s28 }
 0x2b8   : > { %v387_v7 = vpop.permute.xlu1 %386 }
 0x2b9   : > { %v389_v8 = vmul.f32 %v637_v6, %v387_v7 }
 0x2bb   : > { %391 = vrot.lane.b32.xlu1 %v389_v8, %s687_s28 }
 0x329   : > { %v305_v10 = vpop.permute.xlu0 %304 }
 0x32a   : > { %v307_v36 = vadd.f32 %v305_v10, %v297_v9  }
 0x32c   : > { %638 = vtanh.f32 %v307_v36 }
 0x32d   : > { %v392_v20 = vpop.permute.xlu1 %391 }
 0x32e   : > { %v394_v34 = vadd.f32 %v392_v20, %v384_v11  }
 0x330   : > { %640 = vtanh.f32 %v394_v34 }
 0x336   : > { %v639_v21 = vpop.eup %638 }
 0x337   : > { %310 = vrot.lane.b32.xlu0 %v639_v21, %s687_s28 }
 0x33a   : > { %v641_v22 = vpop.eup %640 }
 0x33b   : > { %397 = vrot.lane.b32.xlu1 %v641_v22, %s687_s28 }
 0x3a9   : > { %v311_v28 = vpop.permute.xlu0 %310 }
 0x3aa   : > { %v313_v30 = vmul.f32 %v635_v3, %v311_v28  }
 0x3ac   : > { %v401_v31 = vpack.c.bf16 %v313_v30, %v313_v30 }
 0x3ad   : > { %v398_v32 = vpop.permute.xlu1 %397 }
 0x3ae   : > { %v409_v33 = vrot.slane %v401_v31, %v408_v29  ;;  %v400_v38 = vmul.f32 %v637_v6, %v398_v32  }
 0x3b0   : > { %v423_v35 = vpack.c.bf16 %v400_v38, %v400_v38  ;;  %v416_v37 = vrot.slane %v409_v33, %v408_v29 }
 0x3b2   : > { %v431_v39 = vrot.slane %v423_v35, %v408_v29  ;;  %417 = vrot.lane.b32.xlu0 %v416_v37, %s685_s5  ;;  %v898_v35 = vmov %v400_v38  ;;  %v899_v37 = vmov %v313_v30 }
 0x3b4   : > { %v438_v40 = vrot.slane %v431_v39, %v408_v29 }
 0x3b6   : > { %439 = vrot.lane.b32.xlu1 %v438_v40, %s685_s5  ;;  %445 = vrot.lane.b32.xlu0 (%p217_p0), %v313_v30, %s689_s4 }
 0x3ba   :  { %451 = vrot.lane.b32.xlu0 (%p217_p0), %v400_v38, %s690_s12 }
 0x423   :  { %219 = sbr.rel (!%p217_p0) target bundleno = 235 (0xeb), region = 75 }
 0x424   : > { %v418_v41 = vpop.permute.xlu0 %417 }
 0x425   : > { %422 = vst.msk [vmem:[%s420_s30] sm:$0x1] %vm421_vm4, %v418_v41 }
 0x428   : > { %v440_v42 = vpop.permute.xlu1 %439  ;;  %v446_v43 = vpop.permute.xlu0 (%p217_p0), %445 }
 0x429   : > { %443 = vst.msk [vmem:[%s442_s11] sm:$0x1] %vm421_vm4, %v440_v42 }
 0x42a   :  { %449 = vst.msk [vmem:[%s890_s9] sm:$0x3] %vm448_vm5, %v446_v43 }
 0x42c   :  { %v452_v44 = vpop.permute.xlu0 %451 }
 0x42d   :  { %455 = vst.msk [vmem:[%s890_s9] sm:$0x3] %vm454_vm6, %v452_v44 }

// kernel: _lambda_.4
= control target key start
LH: loop header
LB: loop body
LE: loop exit
PB: predicated region body
PF: predicated region fallthrough
CT: control target
= control target key end

     0   :  { %v761_v0 = vmov 0.0   ;;  %vm762_vm0 = vmmov 0   ;;  %vm59_vm1 = vcmask 261120   ;;  %v904_v47 = vmov 0.0   ;;  %s962_s8 = inlined_call_operand.vmem [shape: f32[2,64], index: 8, kind: output, shape index: {}]   ;;  %s963_s2 = inlined_call_operand.vmem [shape: bf16[64,128], index: 2, kind: input, shape index: {}]   ;;  %s964_s1 = inlined_call_operand.vmem [shape: bf16[16,32], index: 1, kind: input, shape index: {}]   ;;  %s965_s0 = inlined_call_operand.vmem [shape: bf16[16,32], index: 0, kind: input, shape index: {}]   ;;  %s966_s5 = inlined_call_operand.vmem [shape: bf16[64,128], index: 5, kind: input, shape index: {}]   ;;  %s967_s3 = inlined_call_operand.vmem [shape: bf16[32,128], index: 3, kind: input, shape index: {}]   ;;  %s968_s6 = inlined_call_operand.vmem [shape: bf16[32,128], index: 6, kind: input, shape index: {}]   ;;  %s969_s4 = inlined_call_operand.vmem [shape: f32[1,128], index: 4, kind: input, shape index: {}]   ;;  %s970_s7 = inlined_call_operand.vmem [shape: f32[1,128], index: 7, kind: input, shape index: {}]  }
   0x1   :  { %597 = vmatprep.subr.bf16.mxu0 %v761_v0  ;;  %605 = vmatprep.subr.bf16.mxu1 %v761_v0  ;;  %v693_v1 = vld [vmem:[%s963_s2 + $0x10] sm:$0xff]   ;;  %v694_v2 = vld [vmem:[%s963_s2] sm:$0xff]   ;;  %v695_v3 = vld [vmem:[%s963_s2 + $0x18] sm:$0xff]   ;;  %v906_v48 = vmov 0.0   ;;  %v908_v49 = vmov 0.0   ;;  %v910_v50 = vmov 0.0  }
   0x2   :  { %601 = vmatprep.mubr.msk.bf16.mxu0 %vm762_vm0, %v761_v0  ;;  %609 = vmatprep.mubr.msk.bf16.mxu1 %vm762_vm0, %v761_v0  ;;  %v696_v4 = vld [vmem:[%s963_s2 + $0x8] sm:$0xff]   ;;  %v697_v5 = vld [vmem:[%s964_s1] sm:$0xff]   ;;  %v699_v7 = vld [vmem:[%s966_s5 + $0x10] sm:$0xff]  }
   0x3   :  { %598 = vmatpush3.bf16.msra.mxu0 %v693_v1  ;;  %606 = vmatpush3.bf16.msra.mxu1 %v694_v2  ;;  %v698_v6 = vld [vmem:[%s965_s0] sm:$0xff]   ;;  %v701_v9 = vld [vmem:[%s966_s5 + $0x18] sm:$0xff]   ;;  %v702_v10 = vld [vmem:[%s966_s5 + $0x8] sm:$0xff]  }
   0x4   :  { %599 = vmatprep.subr.bf16.mxu0 %v761_v0  ;;  %607 = vmatprep.subr.bf16.mxu1 %v761_v0  ;;  %v700_v8 = vld [vmem:[%s966_s5] sm:$0xff]   ;;  %v871_v15 = vld [vmem:[%s967_s3 + $0x8] sm:$0xf]  ;;  %v876_v16 = vld [vmem:[%s967_s3 + $0xc] sm:$0xf] }
   0x5   :  { %v703_v11 = vld [vmem:[%s964_s1] sm:$0xff]   ;;  %v891_v19 = vld [vmem:[%s968_s6 + $0x8] sm:$0xf]  ;;  %v896_v20 = vld [vmem:[%s968_s6 + $0xc] sm:$0xf] }
   0x6   :  { %v704_v12 = vld [vmem:[%s965_s0] sm:$0xff]  }
   0x7   :  { %600 = vmatpush3.bf16.msra.mxu0 %v695_v3  ;;  %608 = vmatpush3.bf16.msra.mxu1 %v696_v4  ;;  %v861_v13 = vld [vmem:[%s967_s3] sm:$0xf]  ;;  %v866_v14 = vld [vmem:[%s967_s3 + $0x4] sm:$0xf] }
   0x8   :  { %613 = vmatprep.subr.bf16.mxu0 %v761_v0  ;;  %621 = vmatprep.subr.bf16.mxu1 %v761_v0  ;;  %v881_v17 = vld [vmem:[%s968_s6] sm:$0xf]  ;;  %v886_v18 = vld [vmem:[%s968_s6 + $0x4] sm:$0xf] }
   0x9   :  { %v559_v23 = vld [vmem:[%s969_s4] ss:$0 sm:$0xff]  ;;  %s912_s4 = smov 0  }
   0xa   :  { %602 = vmatmul.mubr.msk.bf16.vlgmr.msra.gmra.mrb[0].mxu0 %vm59_vm1, %v697_v5  ;;  %610 = vmatmul.mubr.msk.bf16.vlgmr.msra.gmra.mrb[0].mxu1 %vm59_vm1, %v698_v6  ;;  %v568_v36 = vld [vmem:[%s970_s7] ss:$0 sm:$0xff] }
   0xb   :  { %614 = vmatpush3.bf16.msra.mxu0 %v699_v7  ;;  %622 = vmatpush3.bf16.msra.mxu1 %v700_v8 }
   0xc   :  { %615 = vmatprep.subr.bf16.mxu0 %v761_v0  ;;  %623 = vmatprep.subr.bf16.mxu1 %v761_v0 }
   0xd   :  { %617 = vmatprep.mubr.msk.bf16.mxu0 %vm762_vm0, %v761_v0  ;;  %625 = vmatprep.mubr.msk.bf16.mxu1 %vm762_vm0, %v761_v0 }
   0xf   :  { %616 = vmatpush3.bf16.msra.mxu0 %v701_v9  ;;  %624 = vmatpush3.bf16.msra.mxu1 %v702_v10 }
  0x12   :  { %618 = vmatmul.mubr.msk.bf16.vlgmr.msra.gmra.mrb[4].mxu0 %vm59_vm1, %v703_v11  ;;  %626 = vmatmul.mubr.msk.bf16.vlgmr.msra.gmra.mrb[4].mxu1 %vm59_vm1, %v704_v12 }
  0xdd   :  { %v97_v21 = vpop.f32.mrb[0].mxu0  ;;  %v158_v22 = vpop.f32.mrb[0].mxu1 }
  0xde   :  { %v603_v24 = vpop.f32.mrb[1].mxu0  ;;  %v159_v25 = vadd.f32 %v158_v22, %v97_v21  ;;  %v611_v26 = vpop.f32.mrb[1].mxu1 }
  0xdf   :  { %v100_v27 = vpop.f32.mrb[2].mxu0  ;;  %v161_v28 = vpop.f32.mrb[2].mxu1 }
  0xe0   :  { %v604_v29 = vpop.f32.mrb[3].mxu0  ;;  %v172_v30 = vadd.f32 %v559_v23, %v159_v25  ;;  %v162_v31 = vadd.f32 %v161_v28, %v100_v27  ;;  %v612_v32 = vpop.f32.mrb[3].mxu1 }
  0xe2   :  { %174 = vst [vmem:[#allocation2] sm:$0xff] %v172_v30  ;;  %v173_v33 = vadd.f32 %v559_v23, %v162_v31 }
  0xe4   :  { %175 = vst [vmem:[#allocation2 + $0x8] sm:$0xff] %v173_v33 }
  0xe5   :  { %v242_v34 = vpop.f32.mrb[4].mxu0  ;;  %v303_v35 = vpop.f32.mrb[4].mxu1 }
  0xe6   :  { %v619_v37 = vpop.f32.mrb[5].mxu0  ;;  %v304_v38 = vadd.f32 %v303_v35, %v242_v34  ;;  %v627_v39 = vpop.f32.mrb[5].mxu1 }
  0xe7   :  { %v245_v40 = vpop.f32.mrb[6].mxu0  ;;  %v306_v41 = vpop.f32.mrb[6].mxu1 }
  0xe8   :  { %v620_v42 = vpop.f32.mrb[7].mxu0  ;;  %v317_v43 = vadd.f32 %v568_v36, %v304_v38  ;;  %v307_v44 = vadd.f32 %v306_v41, %v245_v40  ;;  %v628_v45 = vpop.f32.mrb[7].mxu1 }
  0xea   :  { %319 = vst [vmem:[#allocation3] sm:$0xff] %v317_v43  ;;  %v318_v46 = vadd.f32 %v568_v36, %v307_v44 }
  0xec   :  { %320 = vst [vmem:[#allocation3 + $0x8] sm:$0xff] %v318_v46 }
  0xed LB: > { %v570_v51 = vcombine.low %v861_v13, %v866_v14  ;;  %v763_v52 = vmov 0.0   ;;  %v575_v53 = vcombine.low %v881_v17, %v886_v18  ;;  %v343_v54 = vpack.c.bf16 %v755_v50, %v755_v50  ;;  %s764_s7 = smov 64   ;;  %s569_s2 = sshll.u32 %s759_s4, 1  ;;  %s759_s4 = sphi %s912_s4, %s334_s4   ;;  %v755_v50 = vphi %v910_v50, %v972_v50   ;;  %v751_v49 = vphi %v908_v49, %v420_v49   ;;  %v747_v48 = vphi %v906_v48, %v971_v48   ;;  %v743_v47 = vphi %v904_v47, %v507_v47  }
  0xee   : > { %629 = vmatprep.subr.bf16.mxu0 %v763_v52  ;;  %637 = vmatprep.subr.bf16.mxu1 %v763_v52  ;;  %v571_v55 = vcombine.low %v871_v15, %v876_v16  ;;  %v576_v56 = vcombine.low %v891_v19, %v896_v20  ;;  %v430_v57 = vpack.c.bf16 %v747_v48, %v747_v48  ;;  %vm765_vm2 = vmmov 0   ;;  %s339_s21 = ssub.s32 7, %s759_s4  ;;  %s341_s23 = scalar_lea.vmem [#allocation2], %s569_s2 }
  0xef   : > { %630 = vmatpush3.bf16.msra.mxu0 %v570_v51  ;;  %638 = vmatpush3.bf16.msra.mxu1 %v575_v53  ;;  %s574_s22 = sshll.u32 %s339_s21, 1  ;;  %v342_v60 = vld [vmem:[%s341_s23] sm:$0x3]  ;;  %s766_s25 = smov 32  }
  0xf0   : > { %631 = vmatprep.subr.bf16.mxu0 %v763_v52  ;;  %345 = vrot.lane.b32.xlu0 %v343_v54, %s764_s7  ;;  %s428_s24 = scalar_lea.vmem [#allocation3], %s574_s22  ;;  %s334_s4 = sadd.s32 1, %s759_s4  }
  0xf1   : > { %633 = vmatprep.mubr.msk.bf16.mxu0 %vm765_vm2, %v763_v52  ;;  %639 = vmatprep.subr.bf16.mxu1 %v763_v52  ;;  %p331_p0 = scmp.ge.s32.totalorder %s334_s4, 8  }
  0xf2   : > { %641 = vmatprep.mubr.msk.bf16.mxu1 %vm765_vm2, %v763_v52  ;;  %s767_s26 = smov (%p331_p0), 64   ;;  %s768_s27 = smov (%p331_p0), 96   ;;  %vm518_vm3 = vcmask (%p331_p0), 254976   ;;  %vm524_vm4 = vcmask (%p331_p0), 517376  }
  0xf3   : > { %632 = vmatpush3.bf16.msra.mxu0 %v571_v55  ;;  %640 = vmatpush3.bf16.msra.mxu1 %v576_v56  ;;  %v429_v1 = vld [vmem:[%s428_s24] sm:$0x3] }
  0xf4   : > { %432 = vrot.lane.b32.xlu0 %v430_v57, %s764_s7 }
 0x162   : > { %v346_v58 = vpop.permute.xlu0 %345 }
 0x163   : > { %634 = vmatmul.mubr.msk.bf16.vlgmr.msra.gmra.mrb[0].mxu0 %vm59_vm1, %v346_v58 }
 0x166   : > { %v433_v59 = vpop.permute.xlu0 %432 }
 0x167   : > { %642 = vmatmul.mubr.msk.bf16.vlgmr.msra.gmra.mrb[0].mxu1 %vm59_vm1, %v433_v59 }
 0x236   : > { %v396_v61 = vpop.f32.mrb[0].mxu0 }
 0x237   : > { %v402_v62 = vadd.f32 %v396_v61, %v342_v60  ;;  %v635_v63 = vpop.f32.mrb[1].mxu0 }
 0x238   : > { %v399_v0 = vpop.f32.mrb[2].mxu0 }
 0x239   : > { %705 = vtanh.f32 %v402_v62  ;;  %v636_v2 = vpop.f32.mrb[3].mxu0  ;;  %v573_v10 = vmul.f32 -1.442695, %v402_v62 }
 0x23a   : > { %v483_v3 = vpop.f32.mrb[0].mxu1 }
 0x23b   : > { %v489_v4 = vadd.f32 %v483_v3, %v429_v1  ;;  %v643_v5 = vpop.f32.mrb[1].mxu1 }
 0x23c   : > { %v486_v6 = vpop.f32.mrb[2].mxu1 }
 0x23d   : > { %707 = vtanh.f32 %v489_v4  ;;  %v644_v7 = vpop.f32.mrb[3].mxu1  ;;  %v578_v11 = vmul.f32 -1.442695, %v489_v4 }
 0x23e   : > { %709 = vpow2.f32 %v573_v10 }
 0x23f   : > { %711 = vpow2.f32 %v578_v11 }
 0x243   : > { %v706_v8 = vpop.eup %705 }
 0x244   : > { %412 = vrot.lane.b32.xlu1 %v706_v8, %s766_s25 }
 0x247   : > { %v708_v9 = vpop.eup %707 }
 0x248   : > { %499 = vrot.lane.b32.xlu1 %v708_v9, %s766_s25  ;;  %v710_v12 = vpop.eup %709 }
 0x249   : > { %v406_v21 = vadd.f32 1.0, %v710_v12  ;;  %v712_v22 = vpop.eup %711 }
 0x24a   : > { %v493_v23 = vadd.f32 1.0, %v712_v22 }
 0x24b   : > { %713 = vrcp.f32 %v406_v21 }
 0x24c   : > { %715 = vrcp.f32 %v493_v23 }
 0x255   : > { %v714_v24 = vpop.eup %713 }
 0x256   : > { %v716_v27 = vpop.eup %715  ;;  %v410_v30 = vmul.f32 %v751_v49, %v714_v24 }
 0x257   : > { %v497_v32 = vmul.f32 %v743_v47, %v716_v27 }
 0x2b6   : > { %v413_v25 = vpop.permute.xlu1 %412 }
 0x2b7   : > { %v415_v26 = vmul.f32 %v714_v24, %v413_v25 }
 0x2b9   : > { %417 = vrot.lane.b32.xlu0 %v415_v26, %s766_s25 }
 0x2ba   : > { %v500_v28 = vpop.permute.xlu1 %499 }
 0x2bb   : > { %v502_v29 = vmul.f32 %v716_v27, %v500_v28 }
 0x2bd   : > { %504 = vrot.lane.b32.xlu1 %v502_v29, %s766_s25 }
 0x32b   : > { %v418_v31 = vpop.permute.xlu0 %417 }
 0x32c   : > { %v420_v49 = vadd.f32 %v418_v31, %v410_v30  }
 0x32e   : > { %717 = vtanh.f32 %v420_v49 }
 0x32f   : > { %v505_v33 = vpop.permute.xlu1 %504 }
 0x330   : > { %v507_v47 = vadd.f32 %v505_v33, %v497_v32  }
 0x332   : > { %719 = vtanh.f32 %v507_v47 }
 0x338   : > { %v718_v34 = vpop.eup %717 }
 0x339   : > { %423 = vrot.lane.b32.xlu0 %v718_v34, %s766_s25 }
 0x33c   : > { %v720_v35 = vpop.eup %719 }
 0x33d   : > { %510 = vrot.lane.b32.xlu1 %v720_v35, %s766_s25 }
 0x3ab   : > { %v424_v36 = vpop.permute.xlu0 %423 }
 0x3ac   : > { %v426_v37 = vmul.f32 %v714_v24, %v424_v36   ;;  %333 = sbr.rel (!%p331_p0) target bundleno = 237 (0xed), region = 61 }
 0x3ae   : > { %v972_v50 = vmov %v426_v37  ;;  %515 = vrot.lane.b32.xlu0 (%p331_p0), %v426_v37, %s767_s26 }
 0x3af   : > { %v511_v38 = vpop.permute.xlu1 %510 }
 0x3b0   : > { %v513_v39 = vmul.f32 %v716_v27, %v511_v38  }
 0x3b2   : > { %v971_v48 = vmov %v513_v39  ;;  %521 = vrot.lane.b32.xlu0 (%p331_p0), %v513_v39, %s768_s27 }
 0x420   :  { %v516_v40 = vpop.permute.xlu0 %515 }
 0x421   :  { %519 = vst.msk [vmem:[%s962_s8] sm:$0x3] %vm518_vm3, %v516_v40 }
 0x424   :  { %v522_v41 = vpop.permute.xlu0 %521 }
 0x425   :  { %525 = vst.msk [vmem:[%s962_s8] sm:$0x3] %vm524_vm4, %v522_v41 }

</bundles_post_ra>
